<compile_context>
chip_gen: v6e
topology: v6e:2x2x1
jax: 0.10.0
libtpu: 0.0.40
codegen_flags: <defaults>
</compile_context>

<pallas_src>
import jax
import jax.numpy as jnp
from jax.experimental import pallas as pl
from jax.experimental.pallas import tpu as pltpu


# Conservative per-call VMEM budget for the streamed operands (works on v7x's
# 64 MiB physical VMEM as well as v5e/v6e's 128 MiB).
_VMEM_TILE_BUDGET_BYTES = 24 * 1024 * 1024
_MAX_TILE_ROWS = 16 * 1024  # ~2 MiB/step of feat at nz=32 -> DMA >> per-step overhead


def _choose_tile_b(B, nz, out_dim, itemsize):
    """Largest batch tile whose double-buffered feat+out blocks fit the budget."""
    per_row = 2 * (nz + out_dim) * itemsize          # x2 for double buffering
    max_rows = max(8, _VMEM_TILE_BUDGET_BYTES // per_row)
    tile = min(B, _MAX_TILE_ROWS, max_rows)
    if tile < B:
        tile = max(8, (tile // 8) * 8)               # sublane multiple for partial grids
    return int(tile)


def _trans_predictor_kernel(feat_ref, wt_ref, b_ref, out_ref):
    # feat_ref: [TILE_B, nz]   (streamed per grid step; K in lanes -> native MXU lhs)
    # wt_ref:   [nz, out_dim]  (resident; native MXU rhs layout [K, N])
    # b_ref:    [1, out_dim]   (resident)
    # out_ref:  [TILE_B, out_dim]
    acc = jnp.dot(feat_ref[...], wt_ref[...], preferred_element_type=jnp.float32)
    out_ref[...] = (acc + b_ref[...].astype(jnp.float32)).astype(out_ref.dtype)


@jax.jit
def trans_predictor_forward(feat, weight, bias):
    """feat: [B, nz], weight: [out_dim, nz] (PyTorch layout), bias: [out_dim]."""
    B, nz = feat.shape
    out_dim = weight.shape[0]

    # One-time tiny layout ops (fused by XLA): rhs in native [K, N], bias as 2-D row.
    w_t = weight.T                     # [nz, out_dim]
    b2d = bias.reshape(1, out_dim)     # [1, out_dim]

    itemsize = jnp.dtype(feat.dtype).itemsize
    tile_b = _choose_tile_b(B, nz, out_dim, itemsize)
    grid = (pl.cdiv(B, tile_b),)

    cost = pl.CostEstimate(
        flops=2 * B * nz * out_dim,
        transcendentals=0,
        bytes_accessed=(B * nz + nz * out_dim + out_dim + B * out_dim) * itemsize,
    )

    return pl.pallas_call(
        _trans_predictor_kernel,
        out_shape=jax.ShapeDtypeStruct((B, out_dim), feat.dtype),
        grid=grid,
        in_specs=[
            pl.BlockSpec((tile_b, nz), lambda i: (i, 0)),     # feat: streamed over B
            pl.BlockSpec((nz, out_dim), lambda i: (0, 0)),    # weight^T: resident
            pl.BlockSpec((1, out_dim), lambda i: (0, 0)),     # bias: resident
        ],
        out_specs=pl.BlockSpec((tile_b, out_dim), lambda i: (i, 0)),
        compiler_params=pltpu.CompilerParams(
            dimension_semantics=("parallel",),                # megacore sharding on v7x
            vmem_limit_bytes=32 * 1024 * 1024,
        ),
        cost_estimate=cost,
    )(feat, w_t, b2d)


def init_trans_predictor(key, nz, orth=True, dtype=jnp.float32):
    """Deterministic PyTorch-style (uniform +-1/sqrt(nz)) Linear init."""
    out_dim = 2 if orth else 3
    kw, kb = jax.random.split(key)
    bound = 1.0 / float(jnp.sqrt(jnp.asarray(nz, dtype=jnp.float32)))
    weight = jax.random.uniform(kw, (out_dim, nz), dtype, -bound, bound)
    bias = jax.random.uniform(kb, (out_dim,), dtype, -bound, bound)
    return weight, bias


if __name__ == "__main__":
    key = jax.random.PRNGKey(0)
    k_feat, k_param, k_big = jax.random.split(key, 3)

    # Small shapes consistent with the module (batch=2, hidden nz=32, orth -> 2 outputs).
    B, nz = 2, 32
    orth = True

    feat = jax.random.normal(k_feat, (B, nz), dtype=jnp.float32)
    weight, bias = init_trans_predictor(k_param, nz, orth=orth)

    trans = trans_predictor_forward(feat, weight, bias)
    trans = jax.block_until_ready(trans)

    ref = feat @ weight.T + bias
    assert trans.shape == (B, 2 if orth else 3)
    assert jnp.allclose(trans, ref, atol=1e-5, rtol=1e-5)

    # Also exercise the tiled (multi-grid-step, ragged final tile) path.
    B_big = 2 * _MAX_TILE_ROWS + 232
    feat_big = jax.random.normal(k_big, (B_big, nz), dtype=jnp.float32)
    trans_big = jax.block_until_ready(trans_predictor_forward(feat_big, weight, bias))
    ref_big = feat_big @ weight.T + bias
    assert trans_big.shape == (B_big, 2)
    assert jnp.allclose(trans_big, ref_big, atol=1e-4, rtol=1e-4)

    print("KERNEL_OK")
</pallas_src>

<mosaic_0001>
module attributes {stable_mosaic.version = 11 : i64} {
  func.func @_trans_predictor_kernel(%arg0: i32, %arg1: memref<2x32xf32, #tpu.memory_space<vmem>>, %arg2: memref<32x2xf32, #tpu.memory_space<vmem>>, %arg3: memref<1x2xf32, #tpu.memory_space<vmem>>, %arg4: memref<2x2xf32, #tpu.memory_space<vmem>>) attributes {dimension_semantics = [#tpu.dimension_semantics<parallel>], iteration_bounds = array<i64: 1>, scalar_prefetch = 0 : i64, scratch_operands = 0 : i64, tpu.core_type = #tpu.core_type<tc>, window_params = [{transform_indices = @transform_0, window_bounds = array<i64: 2, 32>}, {pipeline_mode = #tpu.pipeline_mode<synchronous>, transform_indices = @transform_1, window_bounds = array<i64: 32, 2>}, {pipeline_mode = #tpu.pipeline_mode<synchronous>, transform_indices = @transform_2, window_bounds = array<i64: 1, 2>}, {transform_indices = @transform_3, window_bounds = array<i64: 2, 2>}]} {
    %c0 = arith.constant 0 : index
    %c0_0 = arith.constant 0 : index
    %0 = vector.load %arg1[%c0, %c0_0] : memref<2x32xf32, #tpu.memory_space<vmem>>, vector<2x32xf32>
    %c0_1 = arith.constant 0 : index
    %c0_2 = arith.constant 0 : index
    %1 = vector.load %arg2[%c0_1, %c0_2] : memref<32x2xf32, #tpu.memory_space<vmem>>, vector<32x2xf32>
    %cst = arith.constant dense<0.000000e+00> : vector<2x2xf32>
    %2 = tpu.matmul %0, %1, %cst {dimension_numbers = #tpu.dot_dimension_numbers<[1], [0], [0], [1], [0, 0, 1, 1], [], []>} : vector<2x32xf32>, vector<32x2xf32>, vector<2x2xf32> -> vector<2x2xf32>
    %c0_3 = arith.constant 0 : index
    %c0_4 = arith.constant 0 : index
    %3 = vector.load %arg3[%c0_3, %c0_4] : memref<1x2xf32, #tpu.memory_space<vmem>>, vector<1x2xf32>
    %4 = vector.broadcast %3 : vector<1x2xf32> to vector<2x2xf32>
    %5 = arith.addf %2, %4 : vector<2x2xf32>
    %c0_5 = arith.constant 0 : index
    %c0_6 = arith.constant 0 : index
    %6 = vector.load %arg4[%c0_5, %c0_6] : memref<2x2xf32, #tpu.memory_space<vmem>>, vector<2x2xf32>
    tpu.vector_store %arg4[%c0_5, %c0_6], %5 {strides = array<i32>} : memref<2x2xf32, #tpu.memory_space<vmem>>, vector<2x2xf32>,
    return
  }
  func.func @transform_0(%arg0: i32) -> (i32, i32) {
    %c0_i32 = arith.constant 0 : i32
    %c0_i32_0 = arith.constant 0 : i32
    return %arg0, %c0_i32 : i32, i32
  }
  func.func @transform_1(%arg0: i32) -> (i32, i32) {
    %c0_i32 = arith.constant 0 : i32
    %c0_i32_0 = arith.constant 0 : i32
    %c0_i32_1 = arith.constant 0 : i32
    return %c0_i32, %c0_i32_0 : i32, i32
  }
  func.func @transform_2(%arg0: i32) -> (i32, i32) {
    %c0_i32 = arith.constant 0 : i32
    %c0_i32_0 = arith.constant 0 : i32
    %c0_i32_1 = arith.constant 0 : i32
    return %c0_i32, %c0_i32_0 : i32, i32
  }
  func.func @transform_3(%arg0: i32) -> (i32, i32) {
    %c0_i32 = arith.constant 0 : i32
    %c0_i32_0 = arith.constant 0 : i32
    return %arg0, %c0_i32 : i32, i32
  }
}

</mosaic_0001>

<bundles_post_ra>
// kernel: trans_predictor_forward.1
= control target key start
LH: loop header
LB: loop body
LE: loop exit
PB: predicated region body
PF: predicated region fallthrough
CT: control target
= control target key end

     0   :  { %v160_v1 = vmov 0.0   ;;  %vm161_vm0 = vmmov 0   ;;  %s204_s0 = inlined_call_operand.vmem [shape: f32[2,32], index: 0, kind: input, shape index: {}]   ;;  %s205_s1 = inlined_call_operand.vmem [shape: f32[32,2], index: 1, kind: input, shape index: {}]   ;;  %s206_s2 = inlined_call_operand.vmem [shape: f32[1,2], index: 2, kind: input, shape index: {}]   ;;  %s207_s3 = inlined_call_operand.hbm [shape: f32[2,2], index: 3, kind: output, shape index: {}]  }
   0x1   :  { %v19_v0 = vld [vmem:[%s205_s1 + $0x18] sm:$0xff]  ;;  %124 = vmatprep.subr.mxu0 %v160_v1  ;;  %v18_v2 = vld [vmem:[%s205_s1 + $0x10] sm:$0xff]  ;;  %132 = vmatprep.mubr.msk.f32.mxu0 %vm161_vm0, %v160_v1 }
   0x2   :  { %125 = vmatpush3.msra.mxu0 %v19_v0 }
   0x3   :  { %8 = vsyncpa [#allocation3], 0  ;;  %126 = vmatprep.subr.mxu0 %v160_v1  ;;  %v17_v3 = vld [vmem:[%s205_s1 + $0x8] sm:$0xff]  ;;  %v16_v4 = vld [vmem:[%s205_s1] sm:$0xff]  ;;  %vm27_vm1 = vcmask 261120   ;;  %s162_s24 = smov [#allocation2]  }
   0x4   :  { %127 = vmatpush3.msra.mxu0 %v18_v2  ;;  %v15_v5 = vld [vmem:[%s204_s0] sm:$0x3]  ;;  %s109_s25 = sshll.u32 %s162_s24, 4  ;;  %vm101_vm2 = vcmask 9216   ;;  %s110_s25 = int_to_ptr.vmem [resolvable:$true] %s109_s25 }
   0x5   :  { %128 = vmatprep.subr.mxu0 %v160_v1  ;;  %v117_v6 = vld [vmem:[%s206_s2] ss:$0 sm:$0xff]  ;;  %s138_s1 = scalar_lea.vmem %s110_s25, 32  ;;  %p143_p1 = scmp.lt.s32.totalorder %s110_s25, %s110_s25 }
   0x6   :  { %129 = vmatpush3.msra.mxu0 %v17_v3  ;;  %p139_p0 = scmp.ne.s32.totalorder %s110_s25, %s138_s1  ;;  %p144_p2 = scmp.lt.s32.totalorder %s138_s1, %s138_s1 }
   0x7   :  { %130 = vmatprep.subr.mxu0 %v160_v1 }
   0x8   :  { %131 = vmatpush3.msra.mxu0 %v16_v4  ;;  %p145_p3 = por %p144_p2, %p143_p1 }
   0x9   :  { %133 = vmatmul.mubr.msk.f32.vlgmr.msra.gmra.mxu0 %vm27_vm1, %v15_v5 }
   0xa   :  { %p146_p4 = pnand %p145_p3, %p139_p0 }
  0xc9   :  { %v97_v7 = vpop.f32.mrf.mxu0 }
  0xca   :  { %v98_v8 = vadd.f32 %v117_v6, %v97_v7 }
  0xcb   :  { %v134_v9 = vpop.f32.mrf.mxu0 }
  0xcc   :  { %102 = vst.msk [vmem:[#allocation2] sm:$0x3] %vm101_vm2, %v98_v8 }
  0xcd   :  { %149 = shalt.err (!%p146_p4)
}
  0xce   :  { %112 = dma.vmem_to_hbm [thread:$0]  %s110_s25, 32, %s207_s3, [#allocation3]  }
  0xcf   :  { %158 = dma.done.wait [#allocation3], 32  }
  0xd0   :  { %159 = vsyncadd [#allocation3], 4294967264 }
  0xd1   :  { %116 = vsyncpa [#allocation3], 1 }

</bundles_post_ra>
